<compile_context>
chip_gen: v6e
topology: v6e:2x2x1
jax: 0.10.0
libtpu: 0.0.40
codegen_flags: <defaults>
</compile_context>

<pallas_src>
import math
from functools import partial

import jax
import jax.numpy as jnp
from jax.experimental import pallas as pl
from jax.experimental.pallas import tpu as pltpu


# ----------------------------- in-kernel helpers -----------------------------

def _layer_norm(x, scale, bias, eps=1e-6):
    """Matches the PyTorch LayerNorm module: scale*(x-mean)/(std_unbiased + eps) + bias."""
    h = x.shape[-1]
    mean = jnp.mean(x, axis=-1, keepdims=True)
    var = jnp.sum((x - mean) ** 2, axis=-1, keepdims=True) * (1.0 / (h - 1))  # unbiased
    std = jnp.sqrt(var)
    inv = pl.reciprocal(std + eps)                    # mul-by-reciprocal instead of wide divide
    return scale * (x - mean) * inv + bias


def _erf(x):
    # Abramowitz & Stegun 7.1.26 rational approximation (max abs err ~1.5e-7, fp32-exact).
    a1, a2, a3, a4, a5 = 0.254829592, -0.284496736, 1.421413741, -1.453152027, 1.061405429
    p = 0.3275911
    sgn = jnp.where(x >= 0.0, 1.0, -1.0)
    ax = jnp.abs(x)
    t = 1.0 / (1.0 + p * ax)
    poly = ((((a5 * t + a4) * t + a3) * t + a2) * t + a1) * t
    return sgn * (1.0 - poly * jnp.exp(-ax * ax))


def _gelu_exact(x):
    # F.gelu default (erf-based, not tanh approximation)
    return 0.5 * x * (1.0 + _erf(x * (1.0 / math.sqrt(2.0))))


# ----------------------------- kernels -----------------------------

def embed_ln_kernel(tok_ref, pos_ref, seg_ref, g_ref, b_ref, o_ref):
    """Sum of token/position/segment embeddings followed by LayerNorm (per batch element)."""
    x = tok_ref[0] + pos_ref[0] + seg_ref[0]          # (L, D)
    o_ref[0] = _layer_norm(x, g_ref[...], b_ref[...])


def transformer_block_kernel(x_ref, kv_ref,
                             wqkv_ref, bqkv_ref, wo_ref, bo_ref,
                             ln1s_ref, ln1b_ref,
                             w1_ref, b1_ref, w2_ref, b2_ref,
                             ln2s_ref, ln2b_ref,
                             o_ref, x1_ref, x1b_ref, acc_ref, *, n_heads):
    """One BERT encoder block.  Grid = (batch tiles, d_ff tiles).

    j == 0     : attention + LN1 for the Bt batch rows -> x1 (f32) / x1b (bf16) scratch, zero acc.
    every j    : acc += gelu(x1b @ W1[:, jT:(j+1)T] + b1) @ W2[jT:(j+1)T, :]   (M = Bt*L rows)
    j == last  : o = LN2(x1 + acc + b2)
    """
    Bt, L, D = x_ref.shape
    d_k = D // n_heads
    j = pl.program_id(1)

    @pl.when(j == 0)
    def _attention_and_init():
        for bt in range(Bt):
            x = x_ref[bt]                                               # (L, D) fp32
            xb = x.astype(jnp.bfloat16)

            # Fused QKV projection: one lane-dense (L,D)@(D,3D) MXU call.
            # 1/sqrt(d_k) is already folded into the Wq / bq slice at init time.
            qkv = jnp.dot(xb, wqkv_ref[...],
                          preferred_element_type=jnp.float32) + bqkv_ref[...]   # (L, 3D) f32

            # additive pad bias: 0 for valid keys, -1e9 for pad keys (finite -> no NaN rows)
            bias = (kv_ref[bt] - 1.0) * 1e9                             # (1, L)

            ctx_parts = []
            for h in range(n_heads):
                q = qkv[:, h * d_k:(h + 1) * d_k].astype(jnp.bfloat16)
                k = qkv[:, D + h * d_k:D + (h + 1) * d_k].astype(jnp.bfloat16)
                v = qkv[:, 2 * D + h * d_k:2 * D + (h + 1) * d_k].astype(jnp.bfloat16)

                s = jnp.einsum('id,jd->ij', q, k,
                               preferred_element_type=jnp.float32)      # (L, L) f32
                s = s + bias
                m = jnp.max(s, axis=-1, keepdims=True)
                e = jnp.exp(s - m)
                p = e * pl.reciprocal(jnp.sum(e, axis=-1, keepdims=True), approx=True)
                ctx_parts.append(
                    jnp.dot(p.astype(jnp.bfloat16), v,
                            preferred_element_type=jnp.float32).astype(jnp.bfloat16))

            # single output projection with K = H*d_k (instead of H small K=d_k dots)
            ctx = jnp.concatenate(ctx_parts, axis=-1)                   # (L, D) bf16
            sa = jnp.dot(ctx, wo_ref[...],
                         preferred_element_type=jnp.float32) + bo_ref[...]

            x1 = _layer_norm(x + sa, ln1s_ref[...], ln1b_ref[...])
            x1_ref[bt * L:(bt + 1) * L, :] = x1                         # f32 for residual / LN2
            x1b_ref[bt * L:(bt + 1) * L, :] = x1.astype(jnp.bfloat16)   # bf16 for FFN matmuls

        acc_ref[...] = jnp.zeros_like(acc_ref)

    # ---- FFN, one d_ff tile per grid step, all Bt*L rows at once ----
    x1b = x1b_ref[...]                                                  # (Bt*L, D) bf16
    h1 = jnp.dot(x1b, w1_ref[...],
                 preferred_element_type=jnp.float32) + b1_ref[...]      # (Bt*L, T)
    acc_ref[...] += jnp.dot(_gelu_exact(h1).astype(jnp.bfloat16), w2_ref[...],
                            preferred_element_type=jnp.float32)         # (Bt*L, D)

    @pl.when(j == pl.num_programs(1) - 1)
    def _finalize():
        y = x1_ref[...] + acc_ref[...] + b2_ref[...]
        yn = _layer_norm(y, ln2s_ref[...], ln2b_ref[...])
        for bt in range(Bt):
            o_ref[bt] = yn[bt * L:(bt + 1) * L]


# ----------------------------- pallas_call wrappers -----------------------------

def _vmem_limit_bytes():
    """Tight on v7x (64 MiB physical VMEM), generous (~100 MiB) on v5e/v6e (128 MiB)."""
    try:
        cap = int(pltpu.get_tpu_info().vmem_capacity_bytes)
    except Exception:
        cap = 64 * 1024 * 1024
    return min(int(cap * 0.8), 100 * 1024 * 1024)


def _ff_tile(d_ff):
    """Pick a lane-aligned d_ff tile: whole d_ff if it fits, else the largest 128-multiple divisor."""
    if d_ff <= 1536:
        return d_ff
    for t in (1536, 1024, 768, 512, 384, 256, 128):
        if d_ff % t == 0:
            return t
    return d_ff


def _pick_batch_tile(B, L, D):
    """Largest divisor of B (<=8) whose resident activations fit a modest VMEM budget.

    Amortizes W1/W2 HBM traffic over Bt*L FFN rows. When B >= 4 we keep at least two
    parallel grid steps so both v7x TensorCores stay busy.
    """
    budget = 16 * 1024 * 1024
    per_row = L * D * (4 + 4 + 2 + 2 * 4 + 2 * 4)   # x1/acc f32, x1b bf16, x/out double-buffered f32
    cap = min(B, 8)
    if B >= 4:
        cap = min(cap, B // 2)
    best = 1
    for bt in range(1, cap + 1):
        if B % bt == 0 and bt * per_row <= budget:
            best = bt
    return best


def embed_layernorm(tok_e, pos_e, seg_e, ln_scale, ln_bias):
    B, L, D = tok_e.shape
    return pl.pallas_call(
        embed_ln_kernel,
        out_shape=jax.ShapeDtypeStruct((B, L, D), jnp.float32),
        grid=(B,),
        in_specs=[
            pl.BlockSpec((1, L, D), lambda b: (b, 0, 0)),   # token embeddings
            pl.BlockSpec((1, L, D), lambda b: (0, 0, 0)),   # position embeddings (shared)
            pl.BlockSpec((1, L, D), lambda b: (b, 0, 0)),   # segment embeddings
            pl.BlockSpec((1, D), lambda b: (0, 0)),         # LN scale
            pl.BlockSpec((1, D), lambda b: (0, 0)),         # LN bias
        ],
        out_specs=pl.BlockSpec((1, L, D), lambda b: (b, 0, 0)),
        compiler_params=pltpu.CompilerParams(dimension_semantics=("parallel",)),
    )(tok_e, pos_e, seg_e, ln_scale, ln_bias)


def transformer_block(x, key_valid, p, n_heads):
    B, L, D = x.shape
    d_ff = p["w1"].shape[1]
    T = _ff_tile(d_ff)
    NT = d_ff // T
    Bt = _pick_batch_tile(B, L, D)

    kernel = partial(transformer_block_kernel, n_heads=n_heads)

    def inv(shape):          # grid-invariant (weight/bias/LN) block
        return pl.BlockSpec(shape, lambda i, j: (0,) * len(shape))

    in_specs = [
        pl.BlockSpec((Bt, L, D), lambda i, j: (i, 0, 0)),    # x
        pl.BlockSpec((Bt, 1, L), lambda i, j: (i, 0, 0)),    # key validity (1=valid, 0=pad)
        inv((D, 3 * D)),                                     # wqkv (bf16, Wq pre-scaled)
        inv((1, 3 * D)),                                     # bqkv
        inv((D, D)),                                         # wo (bf16)
        inv((1, D)),                                         # bo
        inv((1, D)), inv((1, D)),                            # ln1 scale / bias
        pl.BlockSpec((D, T), lambda i, j: (0, j)),           # w1 tile (bf16)
        pl.BlockSpec((1, T), lambda i, j: (0, j)),           # b1 tile
        pl.BlockSpec((T, D), lambda i, j: (j, 0)),           # w2 tile (bf16)
        inv((1, D)),                                         # b2
        inv((1, D)), inv((1, D)),                            # ln2 scale / bias
    ]

    return pl.pallas_call(
        kernel,
        out_shape=jax.ShapeDtypeStruct((B, L, D), jnp.float32),
        grid=(B // Bt, NT),
        in_specs=in_specs,
        out_specs=pl.BlockSpec((Bt, L, D), lambda i, j: (i, 0, 0)),
        scratch_shapes=[
            pltpu.VMEM((Bt * L, D), jnp.float32),    # x1  = LN1(x + SA(x)), f32 (residual/LN2)
            pltpu.VMEM((Bt * L, D), jnp.bfloat16),   # x1b = bf16 copy for the FFN matmuls
            pltpu.VMEM((Bt * L, D), jnp.float32),    # FFN accumulator
        ],
        compiler_params=pltpu.CompilerParams(
            dimension_semantics=("parallel", "arbitrary"),
            vmem_limit_bytes=_vmem_limit_bytes()),
    )(x, key_valid,
      p["wqkv"], p["bqkv"], p["wo"], p["bo"], p["ln1_s"], p["ln1_b"],
      p["w1"], p["b1"], p["w2"], p["b2"], p["ln2_s"], p["ln2_b"])


# ----------------------------- parameter init & full forward -----------------------------

def init_params(key, vocab_size, seq_len, d_model, d_ff, n_layers, n_heads, pad_id):
    d_k = d_model // n_heads
    keys = jax.random.split(key, 3 + n_layers)

    tok = jax.random.normal(keys[0], (vocab_size, d_model), jnp.float32) * 0.02
    tok = tok.at[pad_id].set(0.0)                       # padding_idx row = 0
    pos = jax.random.normal(keys[1], (seq_len, d_model), jnp.float32) * 0.02
    seg = jax.random.normal(keys[2], (3, d_model), jnp.float32) * 0.02
    seg = seg.at[0].set(0.0)                            # padding_idx=0 row = 0

    def lin(k, din, dout):                              # (in, out) layout, y = x @ W + b
        bound = 1.0 / math.sqrt(din)
        return jax.random.uniform(k, (din, dout), jnp.float32, -bound, bound)

    inv_sqrt_dk = 1.0 / math.sqrt(d_k)

    layers = []
    for i in range(n_layers):
        lk = jax.random.split(keys[3 + i], 6)
        wq, wk, wv, wo = (lin(lk[t], d_model, d_model) for t in range(4))
        # fused QKV with 1/sqrt(d_k) folded into the Q slice (one-time weight transform)
        wqkv = jnp.concatenate([wq * inv_sqrt_dk, wk, wv], axis=1)      # (D, 3D)
        layers.append(dict(
            wqkv=wqkv.astype(jnp.bfloat16),
            bqkv=jnp.zeros((1, 3 * d_model), jnp.float32),
            wo=wo.astype(jnp.bfloat16),                                 # (D, D)
            bo=jnp.zeros((1, d_model), jnp.float32),
            ln1_s=jnp.ones((1, d_model), jnp.float32), ln1_b=jnp.zeros((1, d_model), jnp.float32),
            w1=lin(lk[4], d_model, d_ff).astype(jnp.bfloat16), b1=jnp.zeros((1, d_ff), jnp.float32),
            w2=lin(lk[5], d_ff, d_model).astype(jnp.bfloat16), b2=jnp.zeros((1, d_model), jnp.float32),
            ln2_s=jnp.ones((1, d_model), jnp.float32), ln2_b=jnp.zeros((1, d_model), jnp.float32),
        ))

    return dict(tok=tok, pos=pos, seg=seg,
                emb_ln_s=jnp.ones((1, d_model), jnp.float32),
                emb_ln_b=jnp.zeros((1, d_model), jnp.float32),
                layers=layers)


def bert_forward(params, tokens, seg, pad_id, n_heads):
    B, L = tokens.shape
    # pad mask as a (B, 1, L) key-validity vector (broadcast over heads & queries in-kernel)
    key_valid = (tokens != pad_id).astype(jnp.float32)[:, None, :]      # (B, 1, L)

    # embedding gathers are glue (plain JAX); sum + LayerNorm happen in the Pallas kernel
    tok_e = jnp.take(params["tok"], tokens, axis=0)                     # (B, L, D)
    seg_e = jnp.take(params["seg"], seg, axis=0)                        # (B, L, D)
    pos_e = params["pos"][:L][None]                                     # (1, L, D)

    x = embed_layernorm(tok_e, pos_e, seg_e, params["emb_ln_s"], params["emb_ln_b"])
    for layer in params["layers"]:
        x = transformer_block(x, key_valid, layer, n_heads)
    return x


# ----------------------------- main -----------------------------

if __name__ == "__main__":
    # small BERT config
    VOCAB, SEQ_LEN, PAD_ID = 50, 8, 0
    D_MODEL, D_FF, N_LAYERS, N_HEADS = 32, 64, 2, 4
    B, L = 2, 8

    key = jax.random.PRNGKey(0)
    k_tok, k_seg, k_par = jax.random.split(key, 3)

    tokens = jax.random.randint(k_tok, (B, L), 1, VOCAB, dtype=jnp.int32)
    tokens = tokens.at[0, -1].set(PAD_ID)                 # exercise the pad mask
    seg_labels = jax.random.randint(k_seg, (B, L), 1, 3, dtype=jnp.int32)

    params = init_params(k_par, VOCAB, SEQ_LEN, D_MODEL, D_FF, N_LAYERS, N_HEADS, PAD_ID)

    out = bert_forward(params, tokens, seg_labels, PAD_ID, N_HEADS)
    out = jax.block_until_ready(out)

    assert out.shape == (B, L, D_MODEL)
    assert bool(jnp.all(jnp.isfinite(out)))
    print("KERNEL_OK")
</pallas_src>

<mosaic_0001>
module attributes {stable_mosaic.version = 11 : i64} {
  func.func @embed_ln_kernel(%arg0: i32, %arg1: memref<1x8x32xf32, #tpu.memory_space<vmem>>, %arg2: memref<1x8x32xf32, #tpu.memory_space<vmem>>, %arg3: memref<1x8x32xf32, #tpu.memory_space<vmem>>, %arg4: memref<1x32xf32, #tpu.memory_space<vmem>>, %arg5: memref<1x32xf32, #tpu.memory_space<vmem>>, %arg6: memref<1x8x32xf32, #tpu.memory_space<vmem>>) attributes {dimension_semantics = [#tpu.dimension_semantics<parallel>], iteration_bounds = array<i64: 2>, scalar_prefetch = 0 : i64, scratch_operands = 0 : i64, tpu.core_type = #tpu.core_type<tc>, window_params = [{transform_indices = @transform_0, window_bounds = array<i64: 1, 8, 32>}, {pipeline_mode = #tpu.pipeline_mode<synchronous>, transform_indices = @transform_1, window_bounds = array<i64: 1, 8, 32>}, {transform_indices = @transform_2, window_bounds = array<i64: 1, 8, 32>}, {pipeline_mode = #tpu.pipeline_mode<synchronous>, transform_indices = @transform_3, window_bounds = array<i64: 1, 32>}, {pipeline_mode = #tpu.pipeline_mode<synchronous>, transform_indices = @transform_4, window_bounds = array<i64: 1, 32>}, {transform_indices = @transform_5, window_bounds = array<i64: 1, 8, 32>}]} {
    %c0 = arith.constant 0 : index
    %c0_0 = arith.constant 0 : index
    %c0_1 = arith.constant 0 : index
    %0 = vector.load %arg1[%c0, %c0_0, %c0_1] : memref<1x8x32xf32, #tpu.memory_space<vmem>>, vector<1x8x32xf32>
    %1 = vector.shape_cast %0 : vector<1x8x32xf32> to vector<8x32xf32>
    %c0_2 = arith.constant 0 : index
    %c0_3 = arith.constant 0 : index
    %c0_4 = arith.constant 0 : index
    %2 = vector.load %arg2[%c0_2, %c0_3, %c0_4] : memref<1x8x32xf32, #tpu.memory_space<vmem>>, vector<1x8x32xf32>
    %3 = vector.shape_cast %2 : vector<1x8x32xf32> to vector<8x32xf32>
    %4 = arith.addf %1, %3 : vector<8x32xf32>
    %c0_5 = arith.constant 0 : index
    %c0_6 = arith.constant 0 : index
    %c0_7 = arith.constant 0 : index
    %5 = vector.load %arg3[%c0_5, %c0_6, %c0_7] : memref<1x8x32xf32, #tpu.memory_space<vmem>>, vector<1x8x32xf32>
    %6 = vector.shape_cast %5 : vector<1x8x32xf32> to vector<8x32xf32>
    %7 = arith.addf %4, %6 : vector<8x32xf32>
    %c0_8 = arith.constant 0 : index
    %c0_9 = arith.constant 0 : index
    %8 = vector.load %arg4[%c0_8, %c0_9] : memref<1x32xf32, #tpu.memory_space<vmem>>, vector<1x32xf32>
    %c0_10 = arith.constant 0 : index
    %c0_11 = arith.constant 0 : index
    %9 = vector.load %arg5[%c0_10, %c0_11] : memref<1x32xf32, #tpu.memory_space<vmem>>, vector<1x32xf32>
    %cst = arith.constant dense<0.000000e+00> : vector<8xf32>
    %10 = vector.multi_reduction <add>, %7, %cst [1] : vector<8x32xf32> to vector<8xf32>
    %11 = vector.shape_cast %10 : vector<8xf32> to vector<8x1xf32>
    %cst_12 = arith.constant 3.200000e+01 : f32
    %12 = vector.broadcast %cst_12 : f32 to vector<8x1xf32>
    %13 = arith.divf %11, %12 : vector<8x1xf32>
    %14 = vector.broadcast %13 : vector<8x1xf32> to vector<8x32xf32>
    %15 = arith.subf %7, %14 : vector<8x32xf32>
    %16 = arith.mulf %15, %15 : vector<8x32xf32>
    %cst_13 = arith.constant dense<0.000000e+00> : vector<8xf32>
    %17 = vector.multi_reduction <add>, %16, %cst_13 [1] : vector<8x32xf32> to vector<8xf32>
    %18 = vector.shape_cast %17 : vector<8xf32> to vector<8x1xf32>
    %cst_14 = arith.constant 0.0322580636 : f32
    %19 = vector.broadcast %cst_14 : f32 to vector<8x1xf32>
    %20 = arith.mulf %18, %19 : vector<8x1xf32>
    %21 = math.sqrt %20 : vector<8x1xf32>
    %cst_15 = arith.constant 9.99999997E-7 : f32
    %22 = vector.broadcast %cst_15 : f32 to vector<8x1xf32>
    %23 = arith.addf %21, %22 : vector<8x1xf32>
    %24 = tpu.reciprocal %23 : vector<8x1xf32> -> vector<8x1xf32>
    %25 = vector.broadcast %13 : vector<8x1xf32> to vector<8x32xf32>
    %26 = arith.subf %7, %25 : vector<8x32xf32>
    %27 = vector.broadcast %8 : vector<1x32xf32> to vector<8x32xf32>
    %28 = arith.mulf %27, %26 : vector<8x32xf32>
    %29 = vector.broadcast %24 : vector<8x1xf32> to vector<8x32xf32>
    %30 = arith.mulf %28, %29 : vector<8x32xf32>
    %31 = vector.broadcast %9 : vector<1x32xf32> to vector<8x32xf32>
    %32 = arith.addf %30, %31 : vector<8x32xf32>
    %c0_16 = arith.constant 0 : index
    %c0_17 = arith.constant 0 : index
    %c0_18 = arith.constant 0 : index
    %33 = vector.load %arg6[%c0_16, %c0_17, %c0_18] : memref<1x8x32xf32, #tpu.memory_space<vmem>>, vector<1x8x32xf32>
    %34 = vector.shape_cast %33 : vector<1x8x32xf32> to vector<8x32xf32>
    %35 = vector.shape_cast %32 : vector<8x32xf32> to vector<1x8x32xf32>
    tpu.vector_store %arg6[%c0_16, %c0_17, %c0_18], %35 {strides = array<i32>} : memref<1x8x32xf32, #tpu.memory_space<vmem>>, vector<1x8x32xf32>,
    return
  }
  func.func @transform_0(%arg0: i32) -> (i32, i32, i32) {
    %c0_i32 = arith.constant 0 : i32
    %c0_i32_0 = arith.constant 0 : i32
    %c0_i32_1 = arith.constant 0 : i32
    return %arg0, %c0_i32, %c0_i32_0 : i32, i32, i32
  }
  func.func @transform_1(%arg0: i32) -> (i32, i32, i32) {
    %c0_i32 = arith.constant 0 : i32
    %c0_i32_0 = arith.constant 0 : i32
    %c0_i32_1 = arith.constant 0 : i32
    %c0_i32_2 = arith.constant 0 : i32
    return %c0_i32, %c0_i32_0, %c0_i32_1 : i32, i32, i32
  }
  func.func @transform_2(%arg0: i32) -> (i32, i32, i32) {
    %c0_i32 = arith.constant 0 : i32
    %c0_i32_0 = arith.constant 0 : i32
    %c0_i32_1 = arith.constant 0 : i32
    return %arg0, %c0_i32, %c0_i32_0 : i32, i32, i32
  }
  func.func @transform_3(%arg0: i32) -> (i32, i32) {
    %c0_i32 = arith.constant 0 : i32
    %c0_i32_0 = arith.constant 0 : i32
    %c0_i32_1 = arith.constant 0 : i32
    return %c0_i32, %c0_i32_0 : i32, i32
  }
  func.func @transform_4(%arg0: i32) -> (i32, i32) {
    %c0_i32 = arith.constant 0 : i32
    %c0_i32_0 = arith.constant 0 : i32
    %c0_i32_1 = arith.constant 0 : i32
    return %c0_i32, %c0_i32_0 : i32, i32
  }
  func.func @transform_5(%arg0: i32) -> (i32, i32, i32) {
    %c0_i32 = arith.constant 0 : i32
    %c0_i32_0 = arith.constant 0 : i32
    %c0_i32_1 = arith.constant 0 : i32
    return %arg0, %c0_i32, %c0_i32_0 : i32, i32, i32
  }
}

</mosaic_0001>

<bundles_post_ra>
// kernel: tpu_custom_call.1
= control target key start
LH: loop header
LB: loop body
LE: loop exit
PB: predicated region body
PF: predicated region fallthrough
CT: control target
= control target key end

     0   :  { %10 = vsyncpa [#allocation3], 0  ;;  %s933_s0 = inlined_call_operand.hbm [shape: f32[2,8,32], index: 0, kind: input, shape index: {}]   ;;  %s934_s1 = inlined_call_operand.hbm [shape: f32[1,8,32], index: 1, kind: input, shape index: {}]   ;;  %s935_s2 = inlined_call_operand.hbm [shape: f32[2,8,32], index: 2, kind: input, shape index: {}]   ;;  %s936_s3 = inlined_call_operand.vmem [shape: f32[1,32], index: 3, kind: input, shape index: {}]   ;;  %s937_s4 = inlined_call_operand.vmem [shape: f32[1,32], index: 4, kind: input, shape index: {}]   ;;  %s938_s5 = inlined_call_operand.hbm [shape: f32[2,8,32], index: 5, kind: output, shape index: {}]  }
   0x1   :  { %12 = vsyncpa [#allocation3 + $0x1], 0 }
   0x2   :  { %13 = vsyncpa [#allocation6], 0 }
   0x3   :  { %14 = vsyncpa [#allocation4], 0 }
   0x4   :  { %16 = vsyncpa [#allocation4 + $0x1], 0  ;;  %s720_s18 = smov 0   ;;  %s722_s19 = smov 0  }
   0x5   :  { %s724_s20 = smov 0   ;;  %s726_s21 = smov 0  }
   0x6 LB: > { %s741_s22 = sadd.s32 1, %s684_s21   ;;  %s29_s23 = sadd.s32 1, %s680_s20  ;;  %s684_s21 = sphi %s726_s21, %s963_s21   ;;  %s680_s20 = sphi %s724_s20, %s962_s20   ;;  %s676_s19 = sphi %s722_s19, %s961_s19   ;;  %s672_s18 = sphi %s720_s18, %s960_s18  }
   0x7   : > { %s26_s24 = ssub.s32 %s684_s21, %s741_s22  ;;  %p939_p0 = scmp.ne.s32.totalorder %s680_s20, %s676_s19 }
   0x8   : > { %p27_p1 = scmp.eq.s32.totalorder %s26_s24, 0  ;;  %p37_p2 = scmp.eq.s32.totalorder %s684_s21, 0 }
   0x9   : > { %p490_p4 = scmp.lt.s32.totalorder %s684_s21, 2  ;;  %s198_s26 = sand.u32 1, %s684_s21  }
   0xa   : > { %s752_s25 = scalar_select %p27_p1, %s680_s20, %s29_s23  }
   0xb   : > { %p38_p5 = por %p37_p2, %p939_p0  ;;  %s200_s27 = sand.u32 1, %s680_s20  }
   0xc   : > { %s759_s28 = sshll.u32 %s200_s27, 3  ;;  %s450_s29 = sshll.u32 %s684_s21, 7 }
   0xd   : > { %s767_s7 = scalar_lea.hbm %s933_s0, %s450_s29  ;;  %s202_s8 = scalar_lea.vmem [#allocation2], %s759_s28 }
   0xe   : > { %s209_s9 = sshll.u32 %s202_s8, 4  ;;  %p770_p6 = pnand %p490_p4, %p38_p5  ;;  %s210_s9 = int_to_ptr.vmem [resolvable:$true] %s209_s9 }
   0xf   : > { %s774_s11 = scalar_lea.sflag [#allocation3], %s198_s26  ;;  %s530_s12 = scalar_lea.hbm %s767_s7, 128 }
  0x10   : > { %p531_p7 = scmp.ne.s32.totalorder %s767_s7, %s530_s12  ;;  %p532_p8 = pneg %p770_p6 }
  0x11   : > { %s535_s15 = scalar_lea.hbm %s933_s0, 256  ;;  %p536_p11 = scmp.lt.s32.totalorder %s767_s7, %s933_s0 }
  0x12   : > { %p533_p9 = pnand %p532_p8, %p531_p7  ;;  %p537_p12 = scmp.lt.s32.totalorder %s535_s15, %s530_s12 }
  0x14   : > { %p534_p10 = pneg %p533_p9  ;;  %p538_p13 = por %p537_p12, %p536_p11 }
  0x16   : > { %p539_p1 = pnand %p538_p13, %p534_p10 }
  0x18   : > { %542 = shalt.err (!%p539_p1)
}
  0x19   : > { %s543_s23 = scalar_lea.vmem %s210_s9, 128  ;;  %s686_s24 = smov [#allocation2]  }
  0x1a   : > { %p544_p2 = scmp.ne.s32.totalorder %s210_s9, %s543_s23  ;;  %s548_s26 = sshll.u32 %s686_s24, 4  ;;  %s549_s26 = int_to_ptr.vmem [resolvable:$false] %s548_s26 }
  0x1b   : > { %s550_s27 = scalar_lea.vmem %s549_s26, 256  ;;  %p551_p7 = scmp.lt.s32.totalorder %s210_s9, %s549_s26 }
  0x1c   : > { %p546_p4 = pnand %p544_p2, %p532_p8  ;;  %p552_p9 = scmp.lt.s32.totalorder %s550_s27, %s543_s23 }
  0x1e   : > { %p547_p5 = pneg %p546_p4  ;;  %p553_p3 = por %p552_p9, %p551_p7 }
  0x20   : > { %p554_p0 = pnand %p553_p3, %p547_p5 }
  0x22   : > { %557 = shalt.err (!%p554_p0)
}
  0x23   : > { %481 = dma.hbm_to_vmem [thread:$0]  (!%p770_p6), %s767_s7, 128, %s210_s9, %s774_s11  }
  0x24   : > { %s798_s30 = sadd.s32 4294967295, %s684_s21   ;;  %s445_s6 = sadd.s32 4294967294, %s684_s21  }
  0x25   : > { %p42_p0 = scmp.ne.s32.totalorder %s676_s19, %s672_s18  ;;  %p940_p3 = scmp.eq.s32.totalorder %s798_s30, 0 }
  0x26   : > { %p155_p10 = scmp.eq.s32.totalorder %s798_s30, 1  ;;  %p161_p11 = scmp.eq.s32.totalorder %s445_s6, 1 }
  0x27   : > { %p807_p12 = por %p940_p3, %p42_p0  ;;  %p446_p13 = scmp.ge.s32.totalorder %s684_s21, 1 }
  0x28   : > { %p947_p1 = scmp.ne.s32.totalorder %s680_s20, %s676_s19  ;;  %p819_p4 = por %p161_p11, %p42_p0 }
  0x29   : > { %s946_s8 = scalar_select %p807_p12, 1, 0 }
  0x2a   : > { %p815_p2 = por %p155_p10, %p947_p1  ;;  %p168_p5 = scmp.lt.s32.totalorder %s684_s21, 3 }
  0x2b   : > { %s949_s9 = scalar_select %p819_p4, 1, 0 }
  0x2c   : > { %s948_s7 = scalar_select %p815_p2, 1, 0 }
  0x2d   : > { %s220_s12 = scalar_lea.vmem [#allocation7], %s759_s28  ;;  %s830_s16 = scalar_lea.hbm %s935_s2, %s450_s29 }
  0x2e   : > { %s227_s13 = sshll.u32 %s220_s12, 4  ;;  %p832_p7 = pnand %p446_p13, %p168_p5  ;;  %s228_s13 = int_to_ptr.vmem [resolvable:$true] %s227_s13 }
  0x2f   : > { %s687_s23 = smov [#allocation5]   ;;  %s558_s28 = scalar_lea.hbm %s830_s16, 128 }
  0x30   : > { %s950_s17 = scalar_select %p832_p7, 1, 0 }
  0x31   : > { %s181_s24 = sshll.u32 %s687_s23, 4  ;;  %p559_p0 = scmp.ne.s32.totalorder %s830_s16, %s558_s28  ;;  %s182_s24 = int_to_ptr.vmem [resolvable:$true] %s181_s24 }
  0x32   : > { %s563_s27 = scalar_lea.hbm %s935_s2, 256  ;;  %p564_p13 = scmp.lt.s32.totalorder %s830_s16, %s935_s2 }
  0x33   : > { %p561_p10 = pnand %p559_p0, %p532_p8  ;;  %p565_p1 = scmp.lt.s32.totalorder %s563_s27, %s558_s28 }
  0x35   : > { %p562_p11 = pneg %p561_p10  ;;  %p566_p5 = por %p565_p1, %p564_p13 }
  0x37   : > { %p567_p3 = pnand %p566_p5, %p562_p11 }
  0x39   : > { %570 = shalt.err (!%p567_p3)
}
  0x3a   : > { %s571_s14 = scalar_lea.vmem %s228_s13, 128  ;;  %s688_s15 = smov [#allocation7]  }
  0x3b   : > { %p572_p9 = scmp.ne.s32.totalorder %s228_s13, %s571_s14  ;;  %s576_s23 = sshll.u32 %s688_s15, 4  ;;  %s577_s23 = int_to_ptr.vmem [resolvable:$false] %s576_s23 }
  0x3c   : > { %s578_s29 = scalar_lea.vmem %s577_s23, 256  ;;  %p579_p10 = scmp.lt.s32.totalorder %s228_s13, %s577_s23 }
  0x3d   : > { %p574_p4 = pnand %p572_p9, %p532_p8  ;;  %p580_p2 = scmp.lt.s32.totalorder %s578_s29, %s571_s14 }
  0x3f   : > { %p575_p0 = pneg %p574_p4  ;;  %p581_p12 = por %p580_p2, %p579_p10 }
  0x41   : > { %p582_p7 = pnand %p581_p12, %p575_p0 }
  0x43   : > { %585 = shalt.err (!%p582_p7)
}
  0x44   : > { %484 = dma.hbm_to_vmem [thread:$0]  (!%p770_p6), %s830_s16, 128, %s228_s13, %s774_s11  }
  0x45   : > { %p951_p3 = scmp.eq.s32.totalorder %s798_s30, 0  ;;  %p952_p8 = scmp.ne.s32.totalorder %s950_s17, 0 }
  0x46   : > { %s597_s28 = scalar_lea.vmem %s182_s24, 128  ;;  %p605_p2 = scmp.lt.s32.totalorder %s182_s24, %s182_s24 }
  0x47   : > { %p953_p4 = pneg %p952_p8  ;;  %p598_p13 = scmp.ne.s32.totalorder %s182_s24, %s597_s28 }
  0x48   : > { %p606_p12 = scmp.lt.s32.totalorder %s597_s28, %s597_s28 }
  0x49   : > { %p475_p9 = pnand %p953_p4, %p951_p3 }
  0x4a   : > { %p607_p7 = por %p606_p12, %p605_p2 }
  0x4b   : > { %p588_p11 = pneg %p475_p9 }
  0x4d   : > { %p600_p1 = pnand %p598_p13, %p588_p11 }
  0x4f   : > { %p601_p5 = pneg %p600_p1 }
  0x51   : > { %p608_p0 = pnand %p607_p7, %p601_p5 }
  0x53   : > { %611 = shalt.err (!%p608_p0)
}
  0x54   : > { %477 = dma.hbm_to_vmem [thread:$0]  (!%p475_p9), %s934_s1, 128, %s182_s24, [#allocation6]  }
  0x55   : > { %236 = sbr.rel (%p952_p8) target bundleno = 439 (0x1b7), region = 40  ;;  %s238_s11 = sand.u32 (!%p952_p8), 1, %s798_s30  }
  0x56   : > { %s240_s13 = sand.u32 (!%p952_p8), 1, %s676_s19   ;;  %s239_s27 = scalar_lea.sflag (!%p952_p8), [#allocation3], %s238_s11 }
  0x57   : > { %s871_s16 = sshll.u32 (!%p952_p8), %s240_s13, 3  ;;  %p954_p6 = scmp.ne.s32.totalorder (!%p952_p8), %s946_s8, 0 }
  0x58   : > { %s242_s6 = scalar_lea.vmem (!%p952_p8), [#allocation2], %s871_s16 }
  0x5a   : > { %655 = dma.done.wait (%p954_p6), %s239_s27, 128  }
  0x5b   : > { %657 = vsyncadd (%p954_p6), %s239_s27, 4294967168  ;;  %p955_p10 = scmp.eq.s32.totalorder %s798_s30, 0 }
  0x5d   : > { %659 = dma.done.wait (%p955_p10), [#allocation6], 128   ;;  %p956_p3 = pmov %p955_p10 }
  0x5e   : > { %s255_s17 = scalar_lea.vmem [#allocation7], %s871_s16 }
  0x5f   : > { %661 = vsyncadd (%p956_p3), [#allocation6], 4294967168 }
  0x60   : > { %663 = dma.done.wait (%p954_p6), %s239_s27, 128  }
  0x61   : > { %665 = vsyncadd (%p954_p6), %s239_s27, 4294967168  ;;  %v287_v0 = vld [vmem:[%s242_s6] sm:$0xff]  ;;  %v288_v1 = vld [vmem:[#allocation5] sm:$0xff]  ;;  %vm294_vm0 = vcmask 261120   ;;  %s461_s15 = sshll.u32 %s798_s30, 7  ;;  %s286_s23 = scalar_lea.vmem [#allocation8], %s871_s16 }
  0x62   : > { %v290_v2 = vld [vmem:[%s255_s17] sm:$0xff]  ;;  %v289_v3 = vadd.f32 %v288_v1, %v287_v0  ;;  %s345_s29 = sshll.u32 %s286_s23, 4  ;;  %s343_s26 = scalar_lea.hbm %s938_s5, %s461_s15  ;;  %s346_s29 = int_to_ptr.vmem [resolvable:$true] %s345_s29 }
  0x63   : > { %v458_v19 = vld [vmem:[%s936_s3] ss:$0 sm:$0xff]  ;;  %s332_s11 = scalar_lea.sflag [#allocation4], %s240_s13  ;;  %s612_s27 = scalar_lea.vmem %s346_s29, 128 }
  0x64   : > { %v291_v4 = vadd.f32 %v290_v2, %v289_v3  ;;  %v459_v22 = vld [vmem:[%s937_s4] ss:$0 sm:$0xff]  ;;  %p613_p8 = scmp.ne.s32.totalorder %s346_s29, %s612_s27  ;;  %p957_p4 = scmp.ne.s32.totalorder %s948_s7, 0 }
  0x65   : > { %s689_s6 = smov [#allocation8]  }
  0x66   : > { %v295_v5 = vsel %vm294_vm0, %v291_v4, 0.0  ;;  %p614_p9 = pnand %p613_p8, %p957_p4  ;;  %s616_s30 = sshll.u32 %s689_s6, 4  ;;  %s617_s30 = int_to_ptr.vmem [resolvable:$false] %s616_s30 }
  0x67   : > { %296 = vadd.xlane.f32.xlu0 %v295_v5  ;;  %s618_s16 = scalar_lea.vmem %s617_s30, 256  ;;  %p619_p13 = scmp.lt.s32.totalorder %s346_s29, %s617_s30 }
  0x68   : > { %p615_p11 = pneg %p614_p9  ;;  %p620_p1 = scmp.lt.s32.totalorder %s618_s16, %s612_s27 }
  0x6a   : > { %p621_p5 = por %p620_p1, %p619_p13 }
  0x6c   : > { %p622_p2 = pnand %p621_p5, %p615_p11 }
  0xf0   : > { %v297_v6 = vpop.xlane.xlu0 %296 }
  0xf1   : > { %v299_v7 = vmul.f32 0.03125, %v297_v6 }
  0xf3   : > { %v300_v8 = vsub.f32 %v291_v4, %v299_v7 }
  0xf5   : > { %v301_v9 = vmul.f32 %v300_v8, %v300_v8  ;;  %v321_v20 = vmul.f32 %v458_v19, %v300_v8 }
  0xf7   : > { %v302_v10 = vsel %vm294_vm0, %v301_v9, 0.0 }
  0xf8   : > { %303 = vadd.xlane.f32.xlu0 %v302_v10 }
 0x181   : > { %v304_v11 = vpop.xlane.xlu0 %303 }
 0x182   : > { %v305_v12 = vmul.f32 0.032258064, %v304_v11 }
 0x184   : > { %526 = vrsqrt.f32 %v305_v12  ;;  %vm308_vm1 = vcmp.eq.f32.partialorder %v305_v12, inf  ;;  %v311_v15 = vand.u32 2147483648, %v305_v12  ;;  %vm310_vm2 = vcmp.eq.f32.partialorder %v305_v12, 0.0 }
 0x191   : > { %v527_v13 = vpop.eup %526 }
 0x192   : > { %v307_v14 = vmul.f32 %v527_v13, %v305_v12 }
 0x194   : > { %v309_v16 = vsel %vm308_vm1, %v305_v12, %v307_v14 }
 0x195   : > { %v312_v17 = vsel %vm310_vm2, %v311_v15, %v309_v16 }
 0x196   : > { %v313_v18 = vadd.f32 1e-06, %v312_v17 }
 0x198   : > { %528 = vrcp.f32 %v313_v18 }
 0x1a5   : > { %v529_v21 = vpop.eup %528 }
 0x1a6   : > { %v322_v23 = vmul.f32 %v529_v21, %v321_v20 }
 0x1a8   : > { %v329_v24 = vadd.f32 %v459_v22, %v322_v23 }
 0x1aa   : > { %330 = vst.msk [vmem:[%s286_s23] sm:$0xff] %vm294_vm0, %v329_v24 }
 0x1ab   : > { %625 = shalt.err (!%p622_p2)
}
 0x1ac   : > { %s626_s17 = scalar_lea.hbm %s343_s26, 128  ;;  %s630_s24 = scalar_lea.hbm %s938_s5, 256 }
 0x1ad   : > { %p627_p12 = scmp.ne.s32.totalorder %s343_s26, %s626_s17  ;;  %p631_p6 = scmp.lt.s32.totalorder %s343_s26, %s938_s5 }
 0x1ae   : > { %p632_p10 = scmp.lt.s32.totalorder %s630_s24, %s626_s17 }
 0x1af   : > { %p628_p7 = pnand %p627_p12, %p957_p4 }
 0x1b0   : > { %p633_p3 = por %p632_p10, %p631_p6 }
 0x1b1   : > { %p629_p0 = pneg %p628_p7 }
 0x1b3   : > { %p634_p8 = pnand %p633_p3, %p629_p0 }
 0x1b5   : > { %637 = shalt.err (!%p634_p8)
}
 0x1b6   : > { %472 = dma.vmem_to_hbm [thread:$0]  (%p957_p4), %s346_s29, 128, %s343_s26, %s332_s11  }
 0x1b7 PF: > { %s357_s15 = sand.u32 1, %s672_s18   ;;  %p958_p9 = scmp.ne.s32.totalorder %s949_s9, 0 }
 0x1b8   : > { %p959_p11 = scmp.ge.s32.totalorder %s684_s21, 2  ;;  %s358_s23 = scalar_lea.sflag [#allocation4], %s357_s15 }
 0x1ba   : > { %p486_p13 = pnand %p959_p11, %p958_p9 }
 0x1bc   : > { %p487_p1 = pneg %p486_p13 }
 0x1be   : > { %667 = dma.done.wait (%p487_p1), %s358_s23, 128  }
 0x1bf   : > { %669 = vsyncadd (%p487_p1), %s358_s23, 4294967168  ;;  %p19_p5 = scmp.ge.s32.totalorder %s741_s22, 4   ;;  %s960_s18 = smov %s676_s19 }
 0x1c0   : > { %s961_s19 = smov %s680_s20  ;;  %s962_s20 = smov %s752_s25 }
 0x1c1   : > { %s963_s21 = smov %s741_s22  ;;  %21 = sbr.rel (!%p19_p5) target bundleno = 6 (0x6), region = 100 }
 0x1c6   :  { %363 = vsyncpa [#allocation3], 1 }
 0x1c7   :  { %365 = vsyncpa [#allocation3 + $0x1], 1 }
 0x1c8   :  { %366 = vsyncpa [#allocation6], 1 }
 0x1c9   :  { %367 = vsyncpa [#allocation4], 1 }
 0x1ca   :  { %369 = vsyncpa [#allocation4 + $0x1], 1 }

</bundles_post_ra>
